<compile_context>
chip_gen: v5e
topology: v5e:2x2
jax: 0.10.0
libtpu: 0.0.40
codegen_flags: <defaults>
</compile_context>

<pallas_src>
import functools
import math

import jax
import jax.numpy as jnp
from jax.experimental import pallas as pl
from jax.experimental.pallas import tpu as pltpu


def _round_up(x, m):
    return (x + m - 1) // m * m


def _erf(z):
    # Abramowitz & Stegun 7.1.26 rational approximation, |err| < 1.5e-7.
    # Only elementwise ops with guaranteed Mosaic lowerings (exp -> EUP).
    a1, a2, a3, a4, a5 = (0.254829592, -0.284496736, 1.421413741,
                          -1.453152027, 1.061405429)
    p = 0.3275911
    s = jnp.where(z < 0.0, -1.0, 1.0)
    az = jnp.abs(z)
    t = 1.0 / (1.0 + p * az)
    poly = ((((a5 * t + a4) * t + a3) * t + a2) * t + a1) * t
    return s * (1.0 - poly * jnp.exp(-az * az))


def _gelu_exact(x):
    # Exact (erf-based) GELU, matching PyTorch nn.GELU() default.
    return 0.5 * x * (1.0 + _erf(x * (1.0 / math.sqrt(2.0))))


def _ffn_resident_kernel(x_ref, w1_ref, b1_ref, w2_ref, b2_ref, o_ref, *,
                         h_chunk):
    """Path A: weights fully resident (single-buffered) in VMEM.

    H is processed in static chunks so the (bm, H) f32 intermediate never
    materializes; only a (bm, h_chunk) working set plus a (bm, O) accumulator
    live at a time.
    """
    bm = x_ref.shape[0]
    H = w1_ref.shape[1]
    o_pad = w2_ref.shape[1]
    x = x_ref[...]
    acc = jnp.zeros((bm, o_pad), jnp.float32)
    for s in range(0, H, h_chunk):          # static unroll, static slices
        hc = min(h_chunk, H - s)
        h = jnp.dot(x, w1_ref[:, s:s + hc], preferred_element_type=jnp.float32)
        h = _gelu_exact(h + b1_ref[:, s:s + hc])
        acc = acc + jnp.dot(h.astype(w2_ref.dtype), w2_ref[s:s + hc, :],
                            preferred_element_type=jnp.float32)
    o_ref[...] = (acc + b2_ref[...]).astype(o_ref.dtype)


def _ffn_streamed_kernel(x_ref, w1_ref, b1_ref, w2_ref, b2_ref, o_ref,
                         acc_ref):
    """Path B: W1 column-tiles / W2 row-tiles streamed along an "arbitrary"
    H grid axis; f32 accumulator in VMEM scratch.  Used when a resident copy
    of the weights would not fit the VMEM budget (e.g. v7x, 64 MiB)."""
    k = pl.program_id(1)

    @pl.when(k == 0)
    def _init():
        acc_ref[...] = jnp.zeros_like(acc_ref)

    h = jnp.dot(x_ref[...], w1_ref[...], preferred_element_type=jnp.float32)
    h = _gelu_exact(h + b1_ref[...])
    acc_ref[...] += jnp.dot(h.astype(w2_ref.dtype), w2_ref[...],
                            preferred_element_type=jnp.float32)

    @pl.when(k == pl.num_programs(1) - 1)
    def _finish():
        o_ref[...] = (acc_ref[...] + b2_ref[...]).astype(o_ref.dtype)


def positionwise_ffn_forward(X, W1, b1, W2, b2, *, block_m=512, block_h=512,
                             h_chunk=512, compute_dtype=None,
                             weights_resident=None):
    """Fused dense1 -> exact GELU -> dense2 (PositionwiseFFN.forward).

    X : (..., D); W1: (D, H); b1: (H,); W2: (H, O); b2: (O,). Returns (..., O).
    compute_dtype : e.g. jnp.bfloat16 to run both matmuls on the bf16 MXU
                    (f32 accumulation; bias add + GELU stay f32).
    weights_resident : None = auto (fit-in-VMEM heuristic), True/False = force.
    block_m : row tile; 512 default (v5e keep 256-512, v6e can use 1024).
    """
    *lead, D = X.shape
    H = W1.shape[1]
    O = W2.shape[1]
    M = int(math.prod(lead)) if lead else 1

    out_dtype = X.dtype
    x2d = X.reshape(M, D)

    # Lane-dense layout: pad H and O up to multiples of 128 once, wrapper-side.
    # Zero-padded columns/rows contribute exactly 0 (GELU(0) = 0), so results
    # are unchanged; avoids masked vst.msk partial stores on the output tail.
    H_pad = _round_up(H, 128)
    O_pad = _round_up(O, 128)
    if H_pad != H:
        W1 = jnp.pad(W1, ((0, 0), (0, H_pad - H)))
        b1 = jnp.pad(b1, (0, H_pad - H))
        W2 = jnp.pad(W2, ((0, H_pad - H), (0, 0)))
    if O_pad != O:
        W2 = jnp.pad(W2, ((0, 0), (0, O_pad - O)))
        b2 = jnp.pad(b2, (0, O_pad - O))

    if compute_dtype is not None:
        x2d = x2d.astype(compute_dtype)
        W1 = W1.astype(compute_dtype)
        W2 = W2.astype(compute_dtype)
    # Bias add happens after the f32 accumulation -> keep biases f32.
    b1_2d = b1.reshape(1, H_pad).astype(jnp.float32)
    b2_2d = b2.reshape(1, O_pad).astype(jnp.float32)

    # Row tile: big enough to amortize the ~0.35us/step overhead, and split so
    # the "parallel" axis has >=2 tiles (keeps both v7x TensorCores busy).
    # No row padding: Pallas masks the partial boundary block, and the garbage
    # rows it computes never reach HBM.
    bm = min(block_m, M)
    if bm == M and M >= 16:
        half = _round_up((M + 1) // 2, 8)
        if half < M:
            bm = half
    if bm < M:
        bm = max(8, (bm // 8) * 8)      # blocked (non-full) dim: multiple of 8
    grid_m = pl.cdiv(M, bm)

    x_sz = jnp.dtype(x2d.dtype).itemsize
    w_sz = jnp.dtype(W1.dtype).itemsize
    o_sz = jnp.dtype(out_dtype).itemsize

    try:
        vmem_cap = pltpu.get_tpu_info().vmem_capacity_bytes
    except Exception:                      # conservative fallback = v7x size
        vmem_cap = 64 * 1024 * 1024

    hc = min(h_chunk, H_pad)
    weight_bytes = (D * H_pad + H_pad * O_pad) * w_sz + (H_pad + O_pad) * 4
    tile_bytes = (2 * bm * D * x_sz + 2 * bm * O_pad * o_sz
                  + bm * O_pad * 4 + 3 * bm * hc * 4)
    need_resident = weight_bytes + tile_bytes + (2 << 20)
    if weights_resident is None:
        weights_resident = need_resident <= int(0.6 * vmem_cap)

    flops = 2 * M * (D * H_pad + H_pad * O_pad)
    transcendentals = M * H_pad

    if weights_resident:
        # ---- Path A: weights single-buffered & resident in VMEM. ----
        vmem_limit = int(min(max(need_resident, 32 << 20), 0.9 * vmem_cap))
        cost = pl.CostEstimate(
            flops=flops, transcendentals=transcendentals,
            bytes_accessed=M * D * x_sz + weight_bytes + M * O_pad * o_sz)
        out2d = pl.pallas_call(
            functools.partial(_ffn_resident_kernel, h_chunk=hc),
            out_shape=jax.ShapeDtypeStruct((M, O_pad), out_dtype),
            grid=(grid_m,),
            in_specs=[
                pl.BlockSpec((bm, D), lambda i: (i, 0)),            # X rows
                pl.BlockSpec(memory_space=pltpu.MemorySpace.VMEM),  # W1 whole
                pl.BlockSpec(memory_space=pltpu.MemorySpace.VMEM),  # b1 whole
                pl.BlockSpec(memory_space=pltpu.MemorySpace.VMEM),  # W2 whole
                pl.BlockSpec(memory_space=pltpu.MemorySpace.VMEM),  # b2 whole
            ],
            out_specs=pl.BlockSpec((bm, O_pad), lambda i: (i, 0)),
            compiler_params=pltpu.CompilerParams(
                dimension_semantics=("parallel",),
                vmem_limit_bytes=vmem_limit),
            cost_estimate=cost,
        )(x2d, W1, b1_2d, W2, b2_2d)
    else:
        # ---- Path B: stream weights along an H-reduction grid axis. ----
        bh = max(128, (min(block_h, H_pad) // 128) * 128)
        while H_pad % bh:   # reduction-axis blocks must tile exactly (no OOB)
            bh -= 128
        grid_h = H_pad // bh
        need_stream = (2 * bm * D * x_sz + 2 * (D * bh + bh * O_pad) * w_sz
                       + 2 * bm * O_pad * o_sz + bm * O_pad * 4
                       + 3 * bm * bh * 4 + (2 << 20))
        vmem_limit = int(min(max(need_stream, 32 << 20), 0.9 * vmem_cap))
        cost = pl.CostEstimate(
            flops=flops, transcendentals=transcendentals,
            bytes_accessed=(M * D * x_sz + grid_m * weight_bytes
                            + M * O_pad * o_sz))
        out2d = pl.pallas_call(
            _ffn_streamed_kernel,
            out_shape=jax.ShapeDtypeStruct((M, O_pad), out_dtype),
            grid=(grid_m, grid_h),
            in_specs=[
                pl.BlockSpec((bm, D), lambda i, k: (i, 0)),      # X: constant over k
                pl.BlockSpec((D, bh), lambda i, k: (0, k)),      # W1 column tile
                pl.BlockSpec((1, bh), lambda i, k: (0, k)),      # b1 tile
                pl.BlockSpec((bh, O_pad), lambda i, k: (k, 0)),  # W2 row tile
                pl.BlockSpec((1, O_pad), lambda i, k: (0, 0)),   # b2
            ],
            out_specs=pl.BlockSpec((bm, O_pad), lambda i, k: (i, 0)),
            scratch_shapes=[pltpu.VMEM((bm, O_pad), jnp.float32)],
            compiler_params=pltpu.CompilerParams(
                dimension_semantics=("parallel", "arbitrary"),
                vmem_limit_bytes=vmem_limit),
            cost_estimate=cost,
        )(x2d, W1, b1_2d, W2, b2_2d)

    if O_pad != O:
        # TODO(synk): one output copy when O % 128 != 0; real transformer
        # widths are already multiples of 128 and skip this.
        out2d = out2d[:, :O]
    return out2d.reshape(*lead, O)


if __name__ == "__main__":
    # Small shapes consistent with the module: X (batch, seq, features).
    B, S, D_in = 2, 8, 32
    num_hiddens, num_outputs = 256, 32

    key = jax.random.PRNGKey(0)
    kx, k1, kb1, k2, kb2 = jax.random.split(key, 5)

    X = jax.random.normal(kx, (B, S, D_in), dtype=jnp.float32)
    # dense1: LazyLinear(num_hiddens) -> weight (D_in, H), bias (H,)
    W1 = jax.random.normal(k1, (D_in, num_hiddens), dtype=jnp.float32) * 0.1
    b1 = jax.random.normal(kb1, (num_hiddens,), dtype=jnp.float32) * 0.1
    # dense2: LazyLinear(num_outputs) -> weight (H, O), bias (O,)
    W2 = jax.random.normal(k2, (num_hiddens, num_outputs), dtype=jnp.float32) * 0.1
    b2 = jax.random.normal(kb2, (num_outputs,), dtype=jnp.float32) * 0.1

    # Plain-JAX reference with exact erf GELU (PyTorch nn.GELU() default).
    hid = jnp.dot(X, W1) + b1
    ref = jnp.dot(jax.nn.gelu(hid, approximate=False), W2) + b2

    # Path A: resident weights, in-kernel H chunking (h_chunk=128 -> 2 chunks).
    out = positionwise_ffn_forward(X, W1, b1, W2, b2, h_chunk=128)
    out = jax.block_until_ready(out)
    assert out.shape == (B, S, num_outputs)
    assert jnp.allclose(out, ref, rtol=2e-3, atol=2e-3), "resident path mismatch"

    # Path B: streamed weights over the H grid axis (block_h=128 -> 2 k-steps).
    out_s = positionwise_ffn_forward(X, W1, b1, W2, b2,
                                     weights_resident=False, block_h=128)
    out_s = jax.block_until_ready(out_s)
    assert jnp.allclose(out_s, ref, rtol=2e-3, atol=2e-3), "streamed path mismatch"

    # bf16 MXU operands (f32 accumulation) — looser tolerance.
    out_bf = positionwise_ffn_forward(X, W1, b1, W2, b2,
                                      compute_dtype=jnp.bfloat16)
    out_bf = jax.block_until_ready(out_bf)
    assert jnp.allclose(out_bf, ref, rtol=5e-2, atol=5e-2), "bf16 path mismatch"

    print("KERNEL_OK")
</pallas_src>

<mosaic_0001>
module attributes {stable_mosaic.version = 11 : i64} {
  func.func @_ffn_resident_kernel(%arg0: i32, %arg1: memref<8x32xf32, #tpu.memory_space<vmem>>, %arg2: memref<32x256xf32, #tpu.memory_space<vmem>>, %arg3: memref<1x256xf32, #tpu.memory_space<vmem>>, %arg4: memref<256x128xf32, #tpu.memory_space<vmem>>, %arg5: memref<1x128xf32, #tpu.memory_space<vmem>>, %arg6: memref<8x128xf32, #tpu.memory_space<vmem>>) attributes {dimension_semantics = [#tpu.dimension_semantics<parallel>], iteration_bounds = array<i64: 2>, scalar_prefetch = 0 : i64, scratch_operands = 0 : i64, tpu.core_type = #tpu.core_type<tc>, window_params = [{transform_indices = @transform_0, window_bounds = array<i64: 8, 32>}, {pipeline_mode = #tpu.pipeline_mode<synchronous>, transform_indices = @transform_1, window_bounds = array<i64: 32, 256>}, {pipeline_mode = #tpu.pipeline_mode<synchronous>, transform_indices = @transform_2, window_bounds = array<i64: 1, 256>}, {pipeline_mode = #tpu.pipeline_mode<synchronous>, transform_indices = @transform_3, window_bounds = array<i64: 256, 128>}, {pipeline_mode = #tpu.pipeline_mode<synchronous>, transform_indices = @transform_4, window_bounds = array<i64: 1, 128>}, {transform_indices = @transform_5, window_bounds = array<i64: 8, 128>}]} {
    %c0 = arith.constant 0 : index
    %c0_0 = arith.constant 0 : index
    %0 = vector.load %arg1[%c0, %c0_0] : memref<8x32xf32, #tpu.memory_space<vmem>>, vector<8x32xf32>
    %cst = arith.constant 0.000000e+00 : f32
    %1 = vector.broadcast %cst : f32 to vector<8x128xf32>
    %c0_1 = arith.constant 0 : index
    %c0_2 = arith.constant 0 : index
    %2 = vector.load %arg2[%c0_1, %c0_2] : memref<32x256xf32, #tpu.memory_space<vmem>>, vector<32x128xf32>
    %cst_3 = arith.constant dense<0.000000e+00> : vector<8x128xf32>
    %3 = tpu.matmul %0, %2, %cst_3 {dimension_numbers = #tpu.dot_dimension_numbers<[1], [0], [0], [1], [0, 0, 1, 1], [], []>} : vector<8x32xf32>, vector<32x128xf32>, vector<8x128xf32> -> vector<8x128xf32>
    %c0_4 = arith.constant 0 : index
    %c0_5 = arith.constant 0 : index
    %4 = vector.load %arg3[%c0_4, %c0_5] : memref<1x256xf32, #tpu.memory_space<vmem>>, vector<1x128xf32>
    %5 = vector.broadcast %4 : vector<1x128xf32> to vector<8x128xf32>
    %6 = arith.addf %3, %5 : vector<8x128xf32>
    %cst_6 = arith.constant 5.000000e-01 : f32
    %7 = vector.broadcast %cst_6 : f32 to vector<8x128xf32>
    %8 = arith.mulf %7, %6 : vector<8x128xf32>
    %cst_7 = arith.constant 0.707106769 : f32
    %9 = vector.broadcast %cst_7 : f32 to vector<8x128xf32>
    %10 = arith.mulf %6, %9 : vector<8x128xf32>
    %cst_8 = arith.constant 0.000000e+00 : f32
    %11 = vector.broadcast %cst_8 : f32 to vector<8x128xf32>
    %12 = arith.cmpf olt, %10, %11 : vector<8x128xf32>
    %cst_9 = arith.constant -1.000000e+00 : f32
    %cst_10 = arith.constant 1.000000e+00 : f32
    %13 = vector.broadcast %cst_9 : f32 to vector<8x128xf32>
    %14 = vector.broadcast %cst_10 : f32 to vector<8x128xf32>
    %15 = arith.select %12, %13, %14 : vector<8x128xi1>, vector<8x128xf32>
    %16 = math.absf %10 : vector<8x128xf32>
    %cst_11 = arith.constant 0.327591091 : f32
    %17 = vector.broadcast %cst_11 : f32 to vector<8x128xf32>
    %18 = arith.mulf %17, %16 : vector<8x128xf32>
    %cst_12 = arith.constant 1.000000e+00 : f32
    %19 = vector.broadcast %cst_12 : f32 to vector<8x128xf32>
    %20 = arith.addf %19, %18 : vector<8x128xf32>
    %cst_13 = arith.constant 1.000000e+00 : f32
    %21 = vector.broadcast %cst_13 : f32 to vector<8x128xf32>
    %22 = arith.divf %21, %20 : vector<8x128xf32>
    %cst_14 = arith.constant 1.06140542 : f32
    %23 = vector.broadcast %cst_14 : f32 to vector<8x128xf32>
    %24 = arith.mulf %23, %22 : vector<8x128xf32>
    %cst_15 = arith.constant -1.45315206 : f32
    %25 = vector.broadcast %cst_15 : f32 to vector<8x128xf32>
    %26 = arith.addf %24, %25 : vector<8x128xf32>
    %27 = arith.mulf %26, %22 : vector<8x128xf32>
    %cst_16 = arith.constant 1.42141378 : f32
    %28 = vector.broadcast %cst_16 : f32 to vector<8x128xf32>
    %29 = arith.addf %27, %28 : vector<8x128xf32>
    %30 = arith.mulf %29, %22 : vector<8x128xf32>
    %cst_17 = arith.constant -0.284496725 : f32
    %31 = vector.broadcast %cst_17 : f32 to vector<8x128xf32>
    %32 = arith.addf %30, %31 : vector<8x128xf32>
    %33 = arith.mulf %32, %22 : vector<8x128xf32>
    %cst_18 = arith.constant 0.254829586 : f32
    %34 = vector.broadcast %cst_18 : f32 to vector<8x128xf32>
    %35 = arith.addf %33, %34 : vector<8x128xf32>
    %36 = arith.mulf %35, %22 : vector<8x128xf32>
    %cst_19 = arith.constant 0.000000e+00 : f32
    %37 = vector.broadcast %cst_19 : f32 to vector<8x128xf32>
    %38 = arith.subf %37, %16 : vector<8x128xf32>
    %39 = arith.mulf %38, %16 : vector<8x128xf32>
    %40 = math.exp %39 : vector<8x128xf32>
    %41 = arith.mulf %36, %40 : vector<8x128xf32>
    %cst_20 = arith.constant 1.000000e+00 : f32
    %42 = vector.broadcast %cst_20 : f32 to vector<8x128xf32>
    %43 = arith.subf %42, %41 : vector<8x128xf32>
    %44 = arith.mulf %15, %43 : vector<8x128xf32>
    %cst_21 = arith.constant 1.000000e+00 : f32
    %45 = vector.broadcast %cst_21 : f32 to vector<8x128xf32>
    %46 = arith.addf %45, %44 : vector<8x128xf32>
    %47 = arith.mulf %8, %46 : vector<8x128xf32>
    %c0_22 = arith.constant 0 : index
    %c0_23 = arith.constant 0 : index
    %48 = vector.load %arg4[%c0_22, %c0_23] : memref<256x128xf32, #tpu.memory_space<vmem>>, vector<128x128xf32>
    %cst_24 = arith.constant dense<0.000000e+00> : vector<8x128xf32>
    %49 = tpu.matmul %47, %48, %cst_24 {dimension_numbers = #tpu.dot_dimension_numbers<[1], [0], [0], [1], [0, 0, 1, 1], [], []>} : vector<8x128xf32>, vector<128x128xf32>, vector<8x128xf32> -> vector<8x128xf32>
    %50 = arith.addf %1, %49 : vector<8x128xf32>
    %c0_25 = arith.constant 0 : index
    %c128 = arith.constant 128 : index
    %51 = vector.load %arg2[%c0_25, %c128] : memref<32x256xf32, #tpu.memory_space<vmem>>, vector<32x128xf32>
    %cst_26 = arith.constant dense<0.000000e+00> : vector<8x128xf32>
    %52 = tpu.matmul %0, %51, %cst_26 {dimension_numbers = #tpu.dot_dimension_numbers<[1], [0], [0], [1], [0, 0, 1, 1], [], []>} : vector<8x32xf32>, vector<32x128xf32>, vector<8x128xf32> -> vector<8x128xf32>
    %c0_27 = arith.constant 0 : index
    %c128_28 = arith.constant 128 : index
    %53 = vector.load %arg3[%c0_27, %c128_28] : memref<1x256xf32, #tpu.memory_space<vmem>>, vector<1x128xf32>
    %54 = vector.broadcast %53 : vector<1x128xf32> to vector<8x128xf32>
    %55 = arith.addf %52, %54 : vector<8x128xf32>
    %cst_29 = arith.constant 5.000000e-01 : f32
    %56 = vector.broadcast %cst_29 : f32 to vector<8x128xf32>
    %57 = arith.mulf %56, %55 : vector<8x128xf32>
    %cst_30 = arith.constant 0.707106769 : f32
    %58 = vector.broadcast %cst_30 : f32 to vector<8x128xf32>
    %59 = arith.mulf %55, %58 : vector<8x128xf32>
    %cst_31 = arith.constant 0.000000e+00 : f32
    %60 = vector.broadcast %cst_31 : f32 to vector<8x128xf32>
    %61 = arith.cmpf olt, %59, %60 : vector<8x128xf32>
    %cst_32 = arith.constant -1.000000e+00 : f32
    %cst_33 = arith.constant 1.000000e+00 : f32
    %62 = vector.broadcast %cst_32 : f32 to vector<8x128xf32>
    %63 = vector.broadcast %cst_33 : f32 to vector<8x128xf32>
    %64 = arith.select %61, %62, %63 : vector<8x128xi1>, vector<8x128xf32>
    %65 = math.absf %59 : vector<8x128xf32>
    %cst_34 = arith.constant 0.327591091 : f32
    %66 = vector.broadcast %cst_34 : f32 to vector<8x128xf32>
    %67 = arith.mulf %66, %65 : vector<8x128xf32>
    %cst_35 = arith.constant 1.000000e+00 : f32
    %68 = vector.broadcast %cst_35 : f32 to vector<8x128xf32>
    %69 = arith.addf %68, %67 : vector<8x128xf32>
    %cst_36 = arith.constant 1.000000e+00 : f32
    %70 = vector.broadcast %cst_36 : f32 to vector<8x128xf32>
    %71 = arith.divf %70, %69 : vector<8x128xf32>
    %cst_37 = arith.constant 1.06140542 : f32
    %72 = vector.broadcast %cst_37 : f32 to vector<8x128xf32>
    %73 = arith.mulf %72, %71 : vector<8x128xf32>
    %cst_38 = arith.constant -1.45315206 : f32
    %74 = vector.broadcast %cst_38 : f32 to vector<8x128xf32>
    %75 = arith.addf %73, %74 : vector<8x128xf32>
    %76 = arith.mulf %75, %71 : vector<8x128xf32>
    %cst_39 = arith.constant 1.42141378 : f32
    %77 = vector.broadcast %cst_39 : f32 to vector<8x128xf32>
    %78 = arith.addf %76, %77 : vector<8x128xf32>
    %79 = arith.mulf %78, %71 : vector<8x128xf32>
    %cst_40 = arith.constant -0.284496725 : f32
    %80 = vector.broadcast %cst_40 : f32 to vector<8x128xf32>
    %81 = arith.addf %79, %80 : vector<8x128xf32>
    %82 = arith.mulf %81, %71 : vector<8x128xf32>
    %cst_41 = arith.constant 0.254829586 : f32
    %83 = vector.broadcast %cst_41 : f32 to vector<8x128xf32>
    %84 = arith.addf %82, %83 : vector<8x128xf32>
    %85 = arith.mulf %84, %71 : vector<8x128xf32>
    %cst_42 = arith.constant 0.000000e+00 : f32
    %86 = vector.broadcast %cst_42 : f32 to vector<8x128xf32>
    %87 = arith.subf %86, %65 : vector<8x128xf32>
    %88 = arith.mulf %87, %65 : vector<8x128xf32>
    %89 = math.exp %88 : vector<8x128xf32>
    %90 = arith.mulf %85, %89 : vector<8x128xf32>
    %cst_43 = arith.constant 1.000000e+00 : f32
    %91 = vector.broadcast %cst_43 : f32 to vector<8x128xf32>
    %92 = arith.subf %91, %90 : vector<8x128xf32>
    %93 = arith.mulf %64, %92 : vector<8x128xf32>
    %cst_44 = arith.constant 1.000000e+00 : f32
    %94 = vector.broadcast %cst_44 : f32 to vector<8x128xf32>
    %95 = arith.addf %94, %93 : vector<8x128xf32>
    %96 = arith.mulf %57, %95 : vector<8x128xf32>
    %c128_45 = arith.constant 128 : index
    %c0_46 = arith.constant 0 : index
    %97 = vector.load %arg4[%c128_45, %c0_46] : memref<256x128xf32, #tpu.memory_space<vmem>>, vector<128x128xf32>
    %cst_47 = arith.constant dense<0.000000e+00> : vector<8x128xf32>
    %98 = tpu.matmul %96, %97, %cst_47 {dimension_numbers = #tpu.dot_dimension_numbers<[1], [0], [0], [1], [0, 0, 1, 1], [], []>} : vector<8x128xf32>, vector<128x128xf32>, vector<8x128xf32> -> vector<8x128xf32>
    %99 = arith.addf %50, %98 : vector<8x128xf32>
    %c0_48 = arith.constant 0 : index
    %c0_49 = arith.constant 0 : index
    %100 = vector.load %arg5[%c0_48, %c0_49] : memref<1x128xf32, #tpu.memory_space<vmem>>, vector<1x128xf32>
    %101 = vector.broadcast %100 : vector<1x128xf32> to vector<8x128xf32>
    %102 = arith.addf %99, %101 : vector<8x128xf32>
    %c0_50 = arith.constant 0 : index
    %c0_51 = arith.constant 0 : index
    %103 = vector.load %arg6[%c0_50, %c0_51] : memref<8x128xf32, #tpu.memory_space<vmem>>, vector<8x128xf32>
    tpu.vector_store %arg6[%c0_50, %c0_51], %102 {strides = array<i32>} : memref<8x128xf32, #tpu.memory_space<vmem>>, vector<8x128xf32>,
    return
  }
  func.func @transform_0(%arg0: i32) -> (i32, i32) {
    %c0_i32 = arith.constant 0 : i32
    %c0_i32_0 = arith.constant 0 : i32
    return %arg0, %c0_i32 : i32, i32
  }
  func.func @transform_1(%arg0: i32) -> (i32, i32) {
    %c0_i32 = arith.constant 0 : i32
    %c0_i32_0 = arith.constant 0 : i32
    %c0_i32_1 = arith.constant 0 : i32
    return %c0_i32, %c0_i32_0 : i32, i32
  }
  func.func @transform_2(%arg0: i32) -> (i32, i32) {
    %c0_i32 = arith.constant 0 : i32
    %c0_i32_0 = arith.constant 0 : i32
    %c0_i32_1 = arith.constant 0 : i32
    return %c0_i32, %c0_i32_0 : i32, i32
  }
  func.func @transform_3(%arg0: i32) -> (i32, i32) {
    %c0_i32 = arith.constant 0 : i32
    %c0_i32_0 = arith.constant 0 : i32
    %c0_i32_1 = arith.constant 0 : i32
    return %c0_i32, %c0_i32_0 : i32, i32
  }
  func.func @transform_4(%arg0: i32) -> (i32, i32) {
    %c0_i32 = arith.constant 0 : i32
    %c0_i32_0 = arith.constant 0 : i32
    %c0_i32_1 = arith.constant 0 : i32
    return %c0_i32, %c0_i32_0 : i32, i32
  }
  func.func @transform_5(%arg0: i32) -> (i32, i32) {
    %c0_i32 = arith.constant 0 : i32
    %c0_i32_0 = arith.constant 0 : i32
    return %arg0, %c0_i32 : i32, i32
  }
}

</mosaic_0001>

<bundles_post_ra>
// kernel: tpu_custom_call.1
= control target key start
LH: loop header
LB: loop body
LE: loop exit
PB: predicated region body
PF: predicated region fallthrough
CT: control target
= control target key end

     0   :  { %10 = vsyncpa [#allocation3], 0  ;;  %s1160_s0 = inlined_call_operand.hbm [shape: f32[16,32], index: 0, kind: input, shape index: {}]   ;;  %s1161_s1 = inlined_call_operand.hbm [shape: f32[32,256], index: 1, kind: input, shape index: {}]   ;;  %s1162_s2 = inlined_call_operand.hbm [shape: f32[1,256], index: 2, kind: input, shape index: {}]   ;;  %s1163_s3 = inlined_call_operand.hbm [shape: f32[256,128], index: 3, kind: input, shape index: {}]   ;;  %s1164_s4 = inlined_call_operand.vmem [shape: f32[1,128], index: 4, kind: input, shape index: {}]   ;;  %s1165_s5 = inlined_call_operand.hbm [shape: f32[16,128], index: 5, kind: output, shape index: {}]  }
   0x1   :  { %12 = vsyncpa [#allocation3 + $0x1], 0 }
   0x2   :  { %13 = vsyncpa [#allocation6], 0 }
   0x3   :  { %14 = vsyncpa [#allocation9], 0 }
   0x4   :  { %15 = vsyncpa [#allocation4], 0 }
   0x5   :  { %17 = vsyncpa [#allocation4 + $0x1], 0  ;;  %s971_s18 = smov 0   ;;  %s973_s19 = smov 0  }
   0x6   :  { %s975_s20 = smov 0   ;;  %s977_s21 = smov 0  }
   0x7 LB: > { %s175_s24 = sshll.u32 %s1161_s1, 4  ;;  %s995_s25 = sadd.s32 4294967295, %s931_s21   ;;  %s931_s21 = sphi %s977_s21, %s1176_s21   ;;  %s927_s20 = sphi %s975_s20, %s1175_s20   ;;  %s923_s19 = sphi %s973_s19, %s1174_s19   ;;  %s919_s18 = sphi %s971_s18, %s1173_s18   ;;  %s176_s24 = int_to_ptr.hbm [resolvable:$true] %s175_s24 }
   0x8   : > { %p625_p0 = scmp.ge.s32.totalorder %s931_s21, 1  ;;  %p44_p1 = scmp.eq.s32.totalorder %s995_s25, 0 }
   0x9   : > { %p164_p2 = scmp.lt.s32.totalorder %s931_s21, 3  ;;  %s933_s27 = smov [#allocation5]  }
   0xa   : > { %s177_s28 = sshll.u32 %s933_s27, 4  ;;  %s190_s6 = sshll.u32 %s1162_s2, 4  ;;  %s178_s28 = int_to_ptr.vmem [resolvable:$true] %s177_s28  ;;  %s191_s6 = int_to_ptr.hbm [resolvable:$true] %s190_s6 }
   0xb   : > { %p1000_p3 = pnand %p625_p0, %p164_p2  ;;  %s201_s10 = sshll.u32 %s1163_s3, 4  ;;  %s202_s10 = int_to_ptr.hbm [resolvable:$true] %s201_s10 }
   0xc   : > { %s934_s11 = smov [#allocation7]   ;;  %s935_s13 = smov 256  }
   0xd   : > { %p660_p4 = pneg %p1000_p3  ;;  %s192_s12 = sshll.u32 %s934_s11, 4  ;;  %s193_s12 = int_to_ptr.vmem [resolvable:$true] %s192_s12 }
   0xe   : > { %s936_s14 = smov 16   ;;  %s937_s15 = smov [#allocation8]  }
   0xf   : > { %p1012_p6 = pnand %p660_p4, %p44_p1  ;;  %s203_s16 = sshll.u32 %s937_s15, 4  ;;  %s204_s16 = int_to_ptr.vmem [resolvable:$true] %s203_s16 }
  0x10   : > { %s938_s17 = smov 128   ;;  %s939_s22 = smov 8  }
  0x11   : > { %663 = dma.hbm_to_vmem [thread:$0]  (!%p1012_p6), %s176_s24, 1024, %s178_s28, [#allocation6], %s935_s13, %s935_s13, %s936_s14  }
  0x12   : > { %666 = dma.hbm_to_vmem [thread:$0]  (!%p1012_p6), %s191_s6, 32, %s193_s12, [#allocation6]  }
  0x13   : > { %669 = dma.hbm_to_vmem [thread:$0]  (!%p1012_p6), %s202_s10, 4096, %s204_s16, [#allocation9], %s938_s17, %s938_s17, %s939_s22  }
  0x14   : > { %s624_s23 = sadd.s32 4294967294, %s931_s21   ;;  %s1027_s24 = sadd.s32 1, %s931_s21  }
  0x15   : > { %s30_s27 = sadd.s32 1, %s927_s20  ;;  %s27_s28 = ssub.s32 %s931_s21, %s1027_s24 }
  0x16   : > { %p37_p7 = scmp.ne.s32.totalorder %s927_s20, %s923_s19  ;;  %p28_p8 = scmp.eq.s32.totalorder %s27_s28, 0 }
  0x17   : > { %p38_p9 = scmp.eq.s32.totalorder %s931_s21, 0  ;;  %p43_p10 = scmp.ne.s32.totalorder %s923_s19, %s919_s18 }
  0x18   : > { %p151_p11 = scmp.eq.s32.totalorder %s995_s25, 1  ;;  %p157_p0 = scmp.eq.s32.totalorder %s624_s23, 1 }
  0x19   : > { %s1039_s29 = scalar_select %p28_p8, %s927_s20, %s30_s27  }
  0x1a   : > { %p1043_p12 = por %p44_p1, %p43_p10  ;;  %p1047_p13 = por %p151_p11, %p37_p7 }
  0x1b   : > { %p39_p2 = por %p38_p9, %p37_p7  ;;  %s220_s7 = sand.u32 1, %s927_s20  }
  0x1c   : > { %p1052_p4 = por %p157_p0, %p43_p10  ;;  %p681_p6 = scmp.lt.s32.totalorder %s931_s21, 2 }
  0x1d   : > { %s630_s9 = sshll.u32 %s220_s7, 3  ;;  %s631_s10 = sshll.u32 %s931_s21, 3 }
  0x1e   : > { %s228_s13 = scalar_lea.hbm %s1160_s0, %s631_s10  ;;  %s224_s15 = scalar_lea.vmem [#allocation2], %s630_s9 }
  0x1f   : > { %s230_s14 = sshll.u32 %s228_s13, 4  ;;  %s232_s16 = sshll.u32 %s224_s15, 4  ;;  %s231_s14 = int_to_ptr.hbm [resolvable:$true] %s230_s14  ;;  %s233_s16 = int_to_ptr.vmem [resolvable:$true] %s232_s16 }
  0x20   : > { %p1061_p8 = pnand %p681_p6, %p39_p2  ;;  %s221_s22 = scalar_lea.sflag [#allocation3], %s220_s7 }
  0x21   : > { %s827_s23 = sshra.s32 %s231_s14, 4  ;;  %s834_s9 = scalar_lea.hbm %s1160_s0, 16  ;;  %s828_s23 = int_to_ptr.hbm [resolvable:$true] %s827_s23 }
  0x22   : > { %s829_s27 = scalar_lea.hbm %s828_s23, 8  ;;  %p831_p9 = pneg %p1061_p8 }
  0x23   : > { %p830_p7 = scmp.ne.s32.totalorder %s828_s23, %s829_s27  ;;  %p835_p0 = scmp.lt.s32.totalorder %s828_s23, %s1160_s0 }
  0x24   : > { %p836_p2 = scmp.lt.s32.totalorder %s834_s9, %s829_s27 }
  0x25   : > { %p832_p10 = pnand %p831_p9, %p830_p7 }
  0x26   : > { %p837_p6 = por %p836_p2, %p835_p0 }
  0x27   : > { %p833_p11 = pneg %p832_p10 }
  0x29   : > { %p838_p5 = pnand %p837_p6, %p833_p11 }
  0x2b   : > { %841 = shalt.err (!%p838_p5)
}
  0x2c   : > { %673 = dma.hbm_to_vmem [thread:$0]  (!%p1061_p8), %s231_s14, 128, %s233_s16, %s221_s22  }
  0x2d   : > { %241 = sbr.rel (%p1000_p3) target bundleno = 384 (0x180), region = 40  ;;  %s1078_s7 = sand.u32 (!%p1000_p3), 1, %s923_s19  }
  0x2e   : > { %s633_s13 = sshll.u32 (!%p1000_p3), %s1078_s7, 3  ;;  %s244_s15 = scalar_lea.sflag (!%p1000_p3), [#allocation3], %s1078_s7 }
  0x2f   : > { %s247_s23 = scalar_lea.vmem (!%p1000_p3), [#allocation2], %s633_s13 }
  0x32   : > { %902 = dma.done.wait (%p1043_p12), %s244_s15, 128  }
  0x33   : > { %904 = vsyncadd (%p1043_p12), %s244_s15, 4294967168 }
  0x34   : > { %906 = dma.done.wait (%p44_p1), [#allocation6], 1056  }
  0x35   : > { %908 = vsyncadd (%p44_p1), [#allocation6], 4294966240 }
  0x36   : > { %910 = dma.done.wait (%p44_p1), [#allocation9], 4096  }
  0x37   : > { %912 = vsyncadd (%p44_p1), [#allocation9], 4294963200  ;;  %v294_v0 = vld [vmem:[#allocation5 + $0x30] sm:$0xff]  ;;  %v382_v1 = vld [vmem:[#allocation5 + $0x38] sm:$0xff]  ;;  %vm299_vm0 = vcmask 261120   ;;  %s641_s26 = sshll.u32 %s995_s25, 3 }
  0x38   : > { %v293_v2 = vld [vmem:[#allocation5 + $0x20] sm:$0xff]  ;;  %315 = vmatpush.msra.mxu0 %v294_v0  ;;  %399 = vmatpush.msra.mxu1 %v382_v1  ;;  %v381_v3 = vld [vmem:[#allocation5 + $0x28] sm:$0xff]  ;;  %v292_v4 = vld [vmem:[#allocation5 + $0x10] sm:$0xff]  ;;  %s520_s16 = scalar_lea.hbm %s1165_s5, %s641_s26  ;;  %s289_s27 = scalar_lea.vmem [#allocation10], %s633_s13 }
  0x39   : > { %v380_v5 = vld [vmem:[#allocation5 + $0x18] sm:$0xff]  ;;  %v291_v6 = vld [vmem:[#allocation5] sm:$0xff]  ;;  %v379_v7 = vld [vmem:[#allocation5 + $0x8] sm:$0xff]  ;;  %s522_s28 = sshll.u32 %s289_s27, 4  ;;  %s524_s10 = sshll.u32 %s520_s16, 4  ;;  %s523_s28 = int_to_ptr.vmem [resolvable:$true] %s522_s28  ;;  %s525_s10 = int_to_ptr.hbm [resolvable:$true] %s524_s10 }
  0x3a   : > { %316 = vmatpush.msra.mxu0 %v293_v2  ;;  %400 = vmatpush.msra.mxu1 %v381_v3  ;;  %v290_v8 = vld [vmem:[%s247_s23] sm:$0xff]  ;;  %v459_v15 = vld [vmem:[#allocation8 + $0xe0] sm:$0xff]  ;;  %v726_v19 = vld [vmem:[#allocation7] ss:$0 sm:$0xff]  ;;  %s510_s25 = scalar_lea.sflag [#allocation4], %s1078_s7  ;;  %s871_s9 = sshra.s32 %s525_s10, 4  ;;  %s872_s9 = int_to_ptr.hbm [resolvable:$true] %s871_s9 }
  0x3b   : > { %v462_v9 = vld [vmem:[#allocation8 + $0xf8] sm:$0xff]  ;;  %v461_v11 = vld [vmem:[#allocation8 + $0xf0] sm:$0xff]  ;;  %v460_v13 = vld [vmem:[#allocation8 + $0xe8] sm:$0xff]  ;;  %s873_s11 = scalar_lea.hbm %s872_s9, 8  ;;  %s877_s23 = scalar_lea.hbm %s1165_s5, 16 }
  0x3c   : > { %317 = vmatpush.msra.mxu0 %v292_v4  ;;  %401 = vmatpush.msra.mxu1 %v380_v5  ;;  %v378_v10 = vld [vmem:[#allocation8 + $0x78] sm:$0xff]  ;;  %v377_v12 = vld [vmem:[#allocation8 + $0x70] sm:$0xff]  ;;  %v376_v14 = vld [vmem:[#allocation8 + $0x68] sm:$0xff]  ;;  %p874_p1 = scmp.ne.s32.totalorder %s872_s9, %s873_s11  ;;  %p878_p12 = scmp.lt.s32.totalorder %s872_s9, %s1165_s5 }
  0x3d   : > { %463 = vmatpush.msra.mxu2 %v462_v9  ;;  %483 = vmatpush.msra.mxu3 %v378_v10  ;;  %v375_v16 = vld [vmem:[#allocation8 + $0x60] sm:$0xff]  ;;  %v458_v17 = vld [vmem:[#allocation8 + $0xd8] sm:$0xff]  ;;  %v457_v21 = vld [vmem:[#allocation8 + $0xd0] sm:$0xff]  ;;  %p879_p8 = scmp.lt.s32.totalorder %s877_s23, %s873_s11 }
  0x3e   : > { %318 = vmatpush.msra.mxu0 %v291_v6  ;;  %402 = vmatpush.msra.mxu1 %v379_v7  ;;  %v374_v18 = vld [vmem:[#allocation8 + $0x58] sm:$0xff]  ;;  %v373_v22 = vld [vmem:[#allocation8 + $0x50] sm:$0xff]  ;;  %v456_v23 = vld [vmem:[#allocation8 + $0xc8] sm:$0xff]  ;;  %p875_p3 = pnand %p874_p1, %p1047_p13 }
  0x3f   : > { %638 = vmatmul.msk.f32.vlgmr.msra.gmra.mxu0 %vm299_vm0, %v290_v8  ;;  %639 = vmatmul.msk.f32.vlgmr.msra.gmra.mxu1 %vm299_vm0, %v290_v8  ;;  %v727_v20 = vld [vmem:[#allocation7 + $0x1] ss:$0 sm:$0xff]  ;;  %v372_v24 = vld [vmem:[#allocation8 + $0x48] sm:$0xff]  ;;  %v455_v29 = vld [vmem:[#allocation8 + $0xc0] sm:$0xff]  ;;  %p880_p7 = por %p879_p8, %p878_p12 }
  0x40   : > { %464 = vmatpush.msra.mxu2 %v461_v11  ;;  %484 = vmatpush.msra.mxu3 %v377_v12  ;;  %v371_v30 = vld [vmem:[#allocation8 + $0x40] sm:$0xff]  ;;  %v454_v33 = vld [vmem:[#allocation8 + $0xb8] sm:$0xff]  ;;  %v453_v37 = vld [vmem:[#allocation8 + $0xb0] sm:$0xff]  ;;  %p876_p5 = pneg %p875_p3 }
  0x41   : > { %v370_v34 = vld [vmem:[#allocation8 + $0x38] sm:$0xff]  ;;  %v369_v38 = vld [vmem:[#allocation8 + $0x30] sm:$0xff]  ;;  %v452_v41 = vld [vmem:[#allocation8 + $0xa8] sm:$0xff] }
  0x42   : > { %465 = vmatpush.msra.mxu2 %v460_v13  ;;  %485 = vmatpush.msra.mxu3 %v376_v14  ;;  %v368_v42 = vld [vmem:[#allocation8 + $0x28] sm:$0xff]  ;;  %v451_v45 = vld [vmem:[#allocation8 + $0xa0] sm:$0xff]  ;;  %v450_v47 = vld [vmem:[#allocation8 + $0x98] sm:$0xff]  ;;  %p881_p9 = pnand %p880_p7, %p876_p5 }
  0x43   : > { %v367_v46 = vld [vmem:[#allocation8 + $0x20] sm:$0xff]  ;;  %v366_v48 = vld [vmem:[#allocation8 + $0x18] sm:$0xff]  ;;  %v449_v49 = vld [vmem:[#allocation8 + $0x90] sm:$0xff] }
  0x44   : > { %466 = vmatpush.msra.mxu2 %v459_v15  ;;  %486 = vmatpush.msra.mxu3 %v375_v16  ;;  %v365_v50 = vld [vmem:[#allocation8 + $0x10] sm:$0xff]  ;;  %v448_v51 = vld [vmem:[#allocation8 + $0x88] sm:$0xff]  ;;  %v447_v54 = vld [vmem:[#allocation8 + $0x80] sm:$0xff] }
  0x45   : > { %v364_v52 = vld [vmem:[#allocation8 + $0x8] sm:$0xff]  ;;  %v363_v55 = vld [vmem:[#allocation8] sm:$0xff] }
  0x46   : > { %467 = vmatpush.msra.mxu2 %v458_v17  ;;  %487 = vmatpush.msra.mxu3 %v374_v18 }
  0x48   : > { %468 = vmatpush.msra.mxu2 %v457_v21  ;;  %488 = vmatpush.msra.mxu3 %v373_v22 }
  0x4a   : > { %469 = vmatpush.msra.mxu2 %v456_v23  ;;  %489 = vmatpush.msra.mxu3 %v372_v24 }
  0x4c   : > { %470 = vmatpush.msra.mxu2 %v455_v29  ;;  %490 = vmatpush.msra.mxu3 %v371_v30 }
  0x4e   : > { %471 = vmatpush.msra.mxu2 %v454_v33  ;;  %491 = vmatpush.msra.mxu3 %v370_v34 }
  0x50   : > { %472 = vmatpush.msra.mxu2 %v453_v37  ;;  %492 = vmatpush.msra.mxu3 %v369_v38 }
  0x52   : > { %473 = vmatpush.msra.mxu2 %v452_v41  ;;  %493 = vmatpush.msra.mxu3 %v368_v42 }
  0x54   : > { %474 = vmatpush.msra.mxu2 %v451_v45  ;;  %494 = vmatpush.msra.mxu3 %v367_v46  ;;  %v940_v45 = vmov 1.0  }
  0x56   : > { %475 = vmatpush.msra.mxu2 %v450_v47  ;;  %495 = vmatpush.msra.mxu3 %v366_v48 }
  0x58   : > { %476 = vmatpush.msra.mxu2 %v449_v49  ;;  %496 = vmatpush.msra.mxu3 %v365_v50 }
  0x5a   : > { %477 = vmatpush.msra.mxu2 %v448_v51  ;;  %497 = vmatpush.msra.mxu3 %v364_v52 }
  0x5c   : > { %478 = vmatpush.msra.mxu2 %v447_v54  ;;  %498 = vmatpush.msra.mxu3 %v363_v55 }
  0xbc   : > { %v320_v25 = vpop.f32.mrf.mxu0  ;;  %v404_v26 = vpop.f32.mrf.mxu1 }
  0xbd   : > { %v1096_v27 = vadd.f32 %v726_v19, %v320_v25  ;;  %v1098_v28 = vadd.f32 %v727_v20, %v404_v26 }
  0xbf   : > { %v1101_v31 = vmul.f32 0.70710677, %v1096_v27  ;;  %v1104_v32 = vmul.f32 0.70710677, %v1098_v28  ;;  %v323_v50 = vmul.f32 0.5, %v1096_v27  ;;  %v407_v52 = vmul.f32 0.5, %v1098_v28 }
  0xc0   : > { %v728_v27 = vld [vmem:[%s1164_s4] ss:$0 sm:$0xff] }
  0xc1   : > { %v1107_v35 = vand.u32 2147483647, %v1101_v31  ;;  %v1110_v36 = vand.u32 2147483647, %v1104_v32  ;;  %vm325_vm9 = vcmp.lt.f32.partialorder %v1101_v31, 0.0  ;;  %vm409_vm10 = vcmp.lt.f32.partialorder %v1104_v32, 0.0 }
  0xc2   : > { %v326_v46 = vsel %vm325_vm9, -1.0, %v940_v45  ;;  %v410_v47 = vsel %vm409_vm10, -1.0, %v940_v45 }
  0xc3   : > { %v328_v39 = vmul.f32 0.3275911, %v1107_v35  ;;  %v412_v40 = vmul.f32 0.3275911, %v1110_v36  ;;  %v354_v8 = vsub.f32 0.0, %v1107_v35  ;;  %v438_v11 = vsub.f32 0.0, %v1110_v36 }
  0xc5   : > { %v329_v43 = vadd.f32 1.0, %v328_v39  ;;  %v413_v44 = vadd.f32 1.0, %v412_v40  ;;  %v355_v16 = vmul.f32 %v354_v8, %v1107_v35  ;;  %v439_v18 = vmul.f32 %v438_v11, %v1110_v36 }
  0xc7   : > { %729 = vrcp.f32 %v329_v43  ;;  %v341_v61 = vand.u32 2147483648, %v329_v43  ;;  %v425_v62 = vand.u32 2147483648, %v413_v44  ;;  %v339_v0 = vand.u32 2147483647, %v329_v43 }
  0xc8   : > { %731 = vrcp.f32 %v413_v44  ;;  %v423_v2 = vand.u32 2147483647, %v413_v44  ;;  %vm335_vm3 = vweird.f32 %v329_v43  ;;  %vm419_vm4 = vweird.f32 %v413_v44 }
  0xc9   : > { %v342_v5 = vor.u32 1.1754944e-38, %v341_v61  ;;  %v426_v6 = vor.u32 1.1754944e-38, %v425_v62  ;;  %vm340_vm7 = vcmp.eq.f32.partialorder %v339_v0, 8.507059e+37  ;;  %v356_v22 = vmul.f32 1.442695, %v355_v16 }
  0xca   : > { %vm424_vm8 = vcmp.eq.f32.partialorder %v423_v2, 8.507059e+37  ;;  %v440_v24 = vmul.f32 1.442695, %v439_v18 }
  0xcb   : > { %733 = vpow2.f32 %v356_v22 }
  0xcc   : > { %735 = vpow2.f32 %v440_v24 }
  0xcd   : > { %v730_v53 = vpop.eup %729 }
  0xce   : > { %v732_v56 = vpop.eup %731  ;;  %v331_v57 = vmul.f32 %v730_v53, %v329_v43  ;;  %vm336_vm1 = vweird.f32 %v730_v53 }
  0xcf   : > { %v415_v58 = vmul.f32 %v732_v56, %v413_v44  ;;  %vm420_vm2 = vweird.f32 %v732_v56  ;;  %vm337_vm5 = vmor %vm335_vm3, %vm336_vm1 }
  0xd0   : > { %v332_v59 = vsub.f32 1.0, %v331_v57  ;;  %vm421_vm6 = vmor %vm419_vm4, %vm420_vm2 }
  0xd1   : > { %v416_v60 = vsub.f32 1.0, %v415_v58  ;;  %v734_v39 = vpop.eup %733 }
  0xd2   : > { %v333_v63 = vmul.f32 %v730_v53, %v332_v59  ;;  %v736_v36 = vpop.eup %735 }
  0xd3   : > { %v417_v1 = vmul.f32 %v732_v56, %v416_v60 }
  0xd4   : > { %v334_v3 = vadd.f32 %v730_v53, %v333_v63 }
  0xd5   : > { %v418_v4 = vadd.f32 %v732_v56, %v417_v1 }
  0xd6   : > { %v338_v7 = vsel %vm337_vm5, %v730_v53, %v334_v3 }
  0xd7   : > { %v422_v9 = vsel %vm421_vm6, %v732_v56, %v418_v4  ;;  %v343_v10 = vsel %vm340_vm7, %v342_v5, %v338_v7 }
  0xd8   : > { %v427_v12 = vsel %vm424_vm8, %v426_v6, %v422_v9  ;;  %v345_v13 = vmul.f32 1.0614054, %v343_v10 }
  0xd9   : > { %v429_v14 = vmul.f32 1.0614054, %v427_v12 }
  0xda   : > { %v346_v15 = vadd.f32 -1.4531521, %v345_v13 }
  0xdb   : > { %v430_v17 = vadd.f32 -1.4531521, %v429_v14 }
  0xdc   : > { %v347_v19 = vmul.f32 %v346_v15, %v343_v10 }
  0xdd   : > { %v431_v20 = vmul.f32 %v430_v17, %v427_v12 }
  0xde   : > { %v348_v21 = vadd.f32 1.4214138, %v347_v19 }
  0xdf   : > { %v432_v23 = vadd.f32 1.4214138, %v431_v20 }
  0xe0   : > { %v349_v25 = vmul.f32 %v348_v21, %v343_v10 }
  0xe1   : > { %v433_v26 = vmul.f32 %v432_v23, %v427_v12 }
  0xe2   : > { %v350_v29 = vadd.f32 -0.28449672, %v349_v25 }
  0xe3   : > { %v434_v30 = vadd.f32 -0.28449672, %v433_v26 }
  0xe4   : > { %v351_v33 = vmul.f32 %v350_v29, %v343_v10 }
  0xe5   : > { %v435_v34 = vmul.f32 %v434_v30, %v427_v12 }
  0xe6   : > { %v352_v37 = vadd.f32 0.2548296, %v351_v33 }
  0xe7   : > { %v436_v38 = vadd.f32 0.2548296, %v435_v34 }
  0xe8   : > { %v353_v35 = vmul.f32 %v352_v37, %v343_v10 }
  0xe9   : > { %v437_v40 = vmul.f32 %v436_v38, %v427_v12 }
  0xea   : > { %v358_v41 = vmul.f32 %v734_v39, %v353_v35 }
  0xeb   : > { %v442_v42 = vmul.f32 %v736_v36, %v437_v40 }
  0xec   : > { %v359_v43 = vsub.f32 1.0, %v358_v41 }
  0xed   : > { %v443_v44 = vsub.f32 1.0, %v442_v42 }
  0xee   : > { %v360_v48 = vmul.f32 %v359_v43, %v326_v46 }
  0xef   : > { %v444_v49 = vmul.f32 %v443_v44, %v410_v47 }
  0xf0   : > { %v361_v51 = vadd.f32 1.0, %v360_v48 }
  0xf1   : > { %v445_v53 = vadd.f32 1.0, %v444_v49 }
  0xf2   : > { %v362_v31 = vmul.f32 %v361_v51, %v323_v50 }
  0xf3   : > { %v446_v54 = vmul.f32 %v445_v53, %v407_v52 }
  0xf4   : > { %499 = vmatmul.f32.vlgmr.msra.gmra.mxu3 %v362_v31 }
  0xf5   : > { %479 = vmatmul.f32.vlgmr.msra.gmra.mxu2 %v446_v54 }
 0x177   : > { %v500_v32 = vpop.f32.mrf.mxu3 }
 0x178   : > { %v480_v55 = vpop.f32.mrf.mxu2 }
 0x179   : > { %v501_v28 = vadd.f32 %v500_v32, %v480_v55 }
 0x17b   : > { %v507_v56 = vadd.f32 %v728_v27, %v501_v28 }
 0x17d   : > { %508 = vst [vmem:[%s289_s27] sm:$0xff] %v507_v56 }
 0x17e   : > { %884 = shalt.err (!%p881_p9)
}
 0x17f   : > { %658 = dma.vmem_to_hbm [thread:$0]  (%p1047_p13), %s523_s28, 128, %s525_s10, %s510_s25  }
 0x180 PF: > { %s536_s7 = sand.u32 1, %s919_s18   ;;  %p1172_p10 = scmp.ge.s32.totalorder %s931_s21, 2 }
 0x181   : > { %s537_s30 = scalar_lea.sflag [#allocation4], %s536_s7 }
 0x182   : > { %p675_p11 = pnand %p1172_p10, %p1052_p4 }
 0x184   : > { %p676_p0 = pneg %p675_p11 }
 0x186   : > { %914 = dma.done.wait (%p676_p0), %s537_s30, 128  }
 0x187   : > { %916 = vsyncadd (%p676_p0), %s537_s30, 4294967168  ;;  %p20_p2 = scmp.ge.s32.totalorder %s1027_s24, 4   ;;  %s1173_s18 = smov %s923_s19 }
 0x188   : > { %s1174_s19 = smov %s927_s20  ;;  %s1175_s20 = smov %s1039_s29 }
 0x189   : > { %s1176_s21 = smov %s1027_s24  ;;  %22 = sbr.rel (!%p20_p2) target bundleno = 7 (0x7), region = 97 }
 0x18e   :  { %543 = vsyncpa [#allocation3], 1 }
 0x18f   :  { %545 = vsyncpa [#allocation3 + $0x1], 1 }
 0x190   :  { %546 = vsyncpa [#allocation6], 1 }
 0x191   :  { %547 = vsyncpa [#allocation9], 1 }
 0x192   :  { %548 = vsyncpa [#allocation4], 1 }
 0x193   :  { %550 = vsyncpa [#allocation4 + $0x1], 1 }

</bundles_post_ra>
